<compile_context>
chip_gen: v7x
topology: tpu7x:2x2x1
jax: 0.10.0
libtpu: 0.0.40
codegen_flags: <defaults>
</compile_context>

<pallas_src>
import jax
import jax.numpy as jnp
from jax.experimental import pallas as pl
from jax.experimental.pallas import tpu as pltpu

KERNEL_SIZE = 7
PAD = 3
LANE = 128


def _pick_channel_tile(C):
    """Largest sublane-friendly channel tile that divides C, else whole C."""
    for tc in (32, 24, 16, 8):
        if C % tc == 0:
            return tc
    return C


def spatial_attention(x, conv1_weight):
    """x: (B, C, L) float32/bfloat16; conv1_weight: (1, 2, 7) (PyTorch OIH).

    Returns sigmoid(conv1d(cat([mean_c(x), max_c(x)], dim=1))) of shape (B, 1, L).
    """
    B, C, L = x.shape
    L_pad = pl.cdiv(L, LANE) * LANE
    TB = 1
    TC = _pick_channel_tile(C)
    n_c_blocks = C // TC
    inv_c = 1.0 / float(C)  # python scalar -> folded as immediate in-kernel

    # Zero-pad L to a lane-dense multiple of 128; the zero columns are exactly
    # the conv's right-edge "same" padding (mean/max over channels of 0 is 0).
    x_p = x if L_pad == L else jnp.pad(x, ((0, 0), (0, 0), (0, L_pad - L)))
    # glue: drop the out-channel dim; scalar taps live in SMEM.
    w2d = conv1_weight.reshape(2, KERNEL_SIZE).astype(jnp.float32)

    def kernel(x_ref, w_ref, o_ref, sum_ref, max_ref):
        c = pl.program_id(1)
        nc = pl.num_programs(1)

        @pl.when(c == 0)
        def _():
            # scratch persists across grid steps: re-init per output block.
            sum_ref[...] = jnp.zeros_like(sum_ref)
            max_ref[...] = jnp.full_like(max_ref, -jnp.inf)

        xb = x_ref[...].astype(jnp.float32)              # (TB, TC, L_pad) f32
        sum_ref[...] += jnp.sum(xb, axis=1, keepdims=True)
        max_ref[...] = jnp.maximum(max_ref[...],
                                   jnp.max(xb, axis=1, keepdims=True))

        @pl.when(c == nc - 1)
        def _():
            avg = sum_ref[...] * inv_c                   # (TB, 1, L_pad)
            mx = max_ref[...]
            lane = jax.lax.broadcasted_iota(jnp.int32, (TB, 1, L_pad), 2)

            # Hoist the 14 SMEM scalar tap reads out of the tap loop.
            w_avg = [w_ref[0, k] for k in range(KERNEL_SIZE)]
            w_max = [w_ref[1, k] for k in range(KERNEL_SIZE)]

            acc = jnp.zeros((TB, 1, L_pad), jnp.float32)
            for k in range(KERNEL_SIZE):                 # static unroll
                shift = PAD - k                          # out[l] += w*src[l-shift]
                if shift == 0:
                    a_k, m_k = avg, mx
                else:
                    a_k = pltpu.roll(avg, shift=shift % L_pad, axis=2)
                    m_k = pltpu.roll(mx, shift=shift % L_pad, axis=2)
                tap = w_avg[k] * a_k + w_max[k] * m_k
                if shift > 0:       # left edge: src index < 0 -> zero padding
                    tap = jnp.where(lane >= shift, tap, 0.0)
                elif shift < 0:     # right edge of the padded buffer (wrap)
                    tap = jnp.where(lane < L_pad + shift, tap, 0.0)
                acc = acc + tap

            o_ref[...] = jax.nn.sigmoid(acc).astype(o_ref.dtype)

    out_p = pl.pallas_call(
        kernel,
        out_shape=jax.ShapeDtypeStruct((B, 1, L_pad), jnp.float32),
        grid_spec=pltpu.PrefetchScalarGridSpec(
            num_scalar_prefetch=0,
            grid=(B // TB, n_c_blocks),                  # reduction axis last
            in_specs=[
                pl.BlockSpec((TB, TC, L_pad), lambda b, c: (b, c, 0)),
                pl.BlockSpec(memory_space=pltpu.SMEM),   # (2, 7) conv taps
            ],
            out_specs=pl.BlockSpec((TB, 1, L_pad), lambda b, c: (b, 0, 0)),
            scratch_shapes=[
                pltpu.VMEM((TB, 1, L_pad), jnp.float32),  # running sum
                pltpu.VMEM((TB, 1, L_pad), jnp.float32),  # running max
            ],
        ),
        compiler_params=pltpu.CompilerParams(
            dimension_semantics=("parallel", "arbitrary"),
            vmem_limit_bytes=32 * 1024 * 1024,
        ),
    )(x_p, w2d)

    return out_p[:, :, :L]  # glue: drop lane padding; keepdim channel axis kept


def _reference(x, conv1_weight):
    """Pure-JAX reference matching the PyTorch forward."""
    avg = jnp.mean(x, axis=1, keepdims=True)
    mx = jnp.max(x, axis=1, keepdims=True)
    cat = jnp.concatenate([avg, mx], axis=1)             # (B, 2, L)
    y = jax.lax.conv_general_dilated(
        cat, conv1_weight, window_strides=(1,), padding=[(PAD, PAD)],
        dimension_numbers=("NCH", "OIH", "NCH"))
    return jax.nn.sigmoid(y)


if __name__ == "__main__":
    key = jax.random.PRNGKey(0)
    kx, kw, kx2 = jax.random.split(key, 3)

    # Deterministic Conv1d(2, 1, 7, bias=False) weight, PyTorch-style init bound.
    fan_in = 2 * KERNEL_SIZE
    bound = 1.0 / (fan_in ** 0.5)
    conv1_weight = jax.random.uniform(
        kw, (1, 2, KERNEL_SIZE), dtype=jnp.float32, minval=-bound, maxval=bound)

    # Primary toy shape from the module.
    B, C, L = 2, 4, 16
    x = jax.random.normal(kx, (B, C, L), dtype=jnp.float32)
    out = jax.block_until_ready(spatial_attention(x, conv1_weight))
    ref = _reference(x, conv1_weight)
    assert out.shape == (B, 1, L), out.shape
    assert jnp.allclose(out, ref, atol=1e-5, rtol=1e-5), float(jnp.abs(out - ref).max())

    # Second shape exercising the C-reduction grid axis (C/TC = 2 steps) and
    # the L lane-padding / roll-mask edge handling (L=200 -> L_pad=256).
    B2, C2, L2 = 2, 64, 200
    x2 = jax.random.normal(kx2, (B2, C2, L2), dtype=jnp.float32)
    out2 = jax.block_until_ready(spatial_attention(x2, conv1_weight))
    ref2 = _reference(x2, conv1_weight)
    assert out2.shape == (B2, 1, L2), out2.shape
    assert jnp.allclose(out2, ref2, atol=1e-5, rtol=1e-5), float(jnp.abs(out2 - ref2).max())

    print("KERNEL_OK")
</pallas_src>

<mosaic_0001>
module attributes {stable_mosaic.version = 11 : i64} {
  func.func @kernel(%arg0: i32, %arg1: i32, %arg2: memref<1x4x128xf32, #tpu.memory_space<vmem>>, %arg3: memref<2x7xf32, #tpu.memory_space<smem>>, %arg4: memref<1x1x128xf32, #tpu.memory_space<vmem>>, %arg5: memref<1x1x128xf32, #tpu.memory_space<vmem>>, %arg6: memref<1x1x128xf32, #tpu.memory_space<vmem>>) attributes {dimension_semantics = [#tpu.dimension_semantics<parallel>, #tpu.dimension_semantics<arbitrary>], iteration_bounds = array<i64: 2, 1>, scalar_prefetch = 0 : i64, scratch_operands = 2 : i64, tpu.core_type = #tpu.core_type<tc>, window_params = [{transform_indices = @transform_0, window_bounds = array<i64: 1, 4, 128>}, {transform_indices = @transform_1, window_bounds = array<i64: 2, 7>}, {transform_indices = @transform_2, window_bounds = array<i64: 1, 1, 128>}]} {
    %c0_i32 = arith.constant 0 : i32
    %0 = arith.cmpi eq, %arg1, %c0_i32 : i32
    %1 = arith.extui %0 : i1 to i32
    %c0_i32_0 = arith.constant 0 : i32
    %2 = arith.cmpi ne, %1, %c0_i32_0 : i32
    scf.if %2 {
      %cst_18 = arith.constant 0.000000e+00 : f32
      %17 = vector.broadcast %cst_18 : f32 to vector<1x1x128xf32>
      %c0_19 = arith.constant 0 : index
      %c0_20 = arith.constant 0 : index
      %c0_21 = arith.constant 0 : index
      %18 = vector.load %arg5[%c0_19, %c0_20, %c0_21] : memref<1x1x128xf32, #tpu.memory_space<vmem>>, vector<1x1x128xf32>
      tpu.vector_store %arg5[%c0_19, %c0_20, %c0_21], %17 {strides = array<i32>} : memref<1x1x128xf32, #tpu.memory_space<vmem>>, vector<1x1x128xf32>,
      %cst_22 = arith.constant 0xFF800000 : f32
      %19 = vector.broadcast %cst_22 : f32 to vector<1x1x128xf32>
      %c0_23 = arith.constant 0 : index
      %c0_24 = arith.constant 0 : index
      %c0_25 = arith.constant 0 : index
      %20 = vector.load %arg6[%c0_23, %c0_24, %c0_25] : memref<1x1x128xf32, #tpu.memory_space<vmem>>, vector<1x1x128xf32>
      tpu.vector_store %arg6[%c0_23, %c0_24, %c0_25], %19 {strides = array<i32>} : memref<1x1x128xf32, #tpu.memory_space<vmem>>, vector<1x1x128xf32>,
    } else {
    }
    %c0 = arith.constant 0 : index
    %c0_1 = arith.constant 0 : index
    %c0_2 = arith.constant 0 : index
    %3 = vector.load %arg2[%c0, %c0_1, %c0_2] : memref<1x4x128xf32, #tpu.memory_space<vmem>>, vector<1x4x128xf32>
    %c0_3 = arith.constant 0 : index
    %c0_4 = arith.constant 0 : index
    %c0_5 = arith.constant 0 : index
    %4 = vector.load %arg5[%c0_3, %c0_4, %c0_5] : memref<1x1x128xf32, #tpu.memory_space<vmem>>, vector<1x1x128xf32>
    %cst = arith.constant dense<0.000000e+00> : vector<1x128xf32>
    %5 = vector.multi_reduction <add>, %3, %cst [1] : vector<1x4x128xf32> to vector<1x128xf32>
    %6 = vector.shape_cast %5 : vector<1x128xf32> to vector<1x1x128xf32>
    %7 = arith.addf %4, %6 : vector<1x1x128xf32>
    %c0_6 = arith.constant 0 : index
    %c0_7 = arith.constant 0 : index
    %c0_8 = arith.constant 0 : index
    %8 = vector.load %arg5[%c0_6, %c0_7, %c0_8] : memref<1x1x128xf32, #tpu.memory_space<vmem>>, vector<1x1x128xf32>
    tpu.vector_store %arg5[%c0_6, %c0_7, %c0_8], %7 {strides = array<i32>} : memref<1x1x128xf32, #tpu.memory_space<vmem>>, vector<1x1x128xf32>,
    %c0_9 = arith.constant 0 : index
    %c0_10 = arith.constant 0 : index
    %c0_11 = arith.constant 0 : index
    %9 = vector.load %arg6[%c0_9, %c0_10, %c0_11] : memref<1x1x128xf32, #tpu.memory_space<vmem>>, vector<1x1x128xf32>
    %cst_12 = arith.constant dense<0xFF800000> : vector<1x128xf32>
    %10 = vector.multi_reduction <maximumf>, %3, %cst_12 [1] : vector<1x4x128xf32> to vector<1x128xf32>
    %11 = vector.shape_cast %10 : vector<1x128xf32> to vector<1x1x128xf32>
    %12 = arith.maximumf %9, %11 : vector<1x1x128xf32>
    %c0_13 = arith.constant 0 : index
    %c0_14 = arith.constant 0 : index
    %c0_15 = arith.constant 0 : index
    %13 = vector.load %arg6[%c0_13, %c0_14, %c0_15] : memref<1x1x128xf32, #tpu.memory_space<vmem>>, vector<1x1x128xf32>
    tpu.vector_store %arg6[%c0_13, %c0_14, %c0_15], %12 {strides = array<i32>} : memref<1x1x128xf32, #tpu.memory_space<vmem>>, vector<1x1x128xf32>,
    %c0_i32_16 = arith.constant 0 : i32
    %14 = arith.cmpi eq, %arg1, %c0_i32_16 : i32
    %15 = arith.extui %14 : i1 to i32
    %c0_i32_17 = arith.constant 0 : i32
    %16 = arith.cmpi ne, %15, %c0_i32_17 : i32
    scf.if %16 {
      %c0_18 = arith.constant 0 : index
      %c0_19 = arith.constant 0 : index
      %c0_20 = arith.constant 0 : index
      %17 = vector.load %arg5[%c0_18, %c0_19, %c0_20] : memref<1x1x128xf32, #tpu.memory_space<vmem>>, vector<1x1x128xf32>
      %cst_21 = arith.constant 2.500000e-01 : f32
      %18 = vector.broadcast %cst_21 : f32 to vector<1x1x128xf32>
      %19 = arith.mulf %17, %18 : vector<1x1x128xf32>
      %c0_22 = arith.constant 0 : index
      %c0_23 = arith.constant 0 : index
      %c0_24 = arith.constant 0 : index
      %20 = vector.load %arg6[%c0_22, %c0_23, %c0_24] : memref<1x1x128xf32, #tpu.memory_space<vmem>>, vector<1x1x128xf32>
      %21 = tpu.iota {dimensions = array<i32: 2>} : vector<1x1x128xi32>
      %c0_25 = arith.constant 0 : index
      %c0_26 = arith.constant 0 : index
      %22 = memref.load %arg3[%c0_25, %c0_26] : memref<2x7xf32, #tpu.memory_space<smem>>
      %c0_27 = arith.constant 0 : index
      %c1 = arith.constant 1 : index
      %23 = memref.load %arg3[%c0_27, %c1] : memref<2x7xf32, #tpu.memory_space<smem>>
      %c0_28 = arith.constant 0 : index
      %c2 = arith.constant 2 : index
      %24 = memref.load %arg3[%c0_28, %c2] : memref<2x7xf32, #tpu.memory_space<smem>>
      %c0_29 = arith.constant 0 : index
      %c3 = arith.constant 3 : index
      %25 = memref.load %arg3[%c0_29, %c3] : memref<2x7xf32, #tpu.memory_space<smem>>
      %c0_30 = arith.constant 0 : index
      %c4 = arith.constant 4 : index
      %26 = memref.load %arg3[%c0_30, %c4] : memref<2x7xf32, #tpu.memory_space<smem>>
      %c0_31 = arith.constant 0 : index
      %c5 = arith.constant 5 : index
      %27 = memref.load %arg3[%c0_31, %c5] : memref<2x7xf32, #tpu.memory_space<smem>>
      %c0_32 = arith.constant 0 : index
      %c6 = arith.constant 6 : index
      %28 = memref.load %arg3[%c0_32, %c6] : memref<2x7xf32, #tpu.memory_space<smem>>
      %c1_33 = arith.constant 1 : index
      %c0_34 = arith.constant 0 : index
      %29 = memref.load %arg3[%c1_33, %c0_34] : memref<2x7xf32, #tpu.memory_space<smem>>
      %c1_35 = arith.constant 1 : index
      %c1_36 = arith.constant 1 : index
      %30 = memref.load %arg3[%c1_35, %c1_36] : memref<2x7xf32, #tpu.memory_space<smem>>
      %c1_37 = arith.constant 1 : index
      %c2_38 = arith.constant 2 : index
      %31 = memref.load %arg3[%c1_37, %c2_38] : memref<2x7xf32, #tpu.memory_space<smem>>
      %c1_39 = arith.constant 1 : index
      %c3_40 = arith.constant 3 : index
      %32 = memref.load %arg3[%c1_39, %c3_40] : memref<2x7xf32, #tpu.memory_space<smem>>
      %c1_41 = arith.constant 1 : index
      %c4_42 = arith.constant 4 : index
      %33 = memref.load %arg3[%c1_41, %c4_42] : memref<2x7xf32, #tpu.memory_space<smem>>
      %c1_43 = arith.constant 1 : index
      %c5_44 = arith.constant 5 : index
      %34 = memref.load %arg3[%c1_43, %c5_44] : memref<2x7xf32, #tpu.memory_space<smem>>
      %c1_45 = arith.constant 1 : index
      %c6_46 = arith.constant 6 : index
      %35 = memref.load %arg3[%c1_45, %c6_46] : memref<2x7xf32, #tpu.memory_space<smem>>
      %cst_47 = arith.constant 0.000000e+00 : f32
      %36 = vector.broadcast %cst_47 : f32 to vector<1x1x128xf32>
      %c3_i32 = arith.constant 3 : i32
      %37 = tpu.dynamic_rotate %19 by %c3_i32 dim 2 : vector<1x1x128xf32>, i32 -> vector<1x1x128xf32>
      %c3_i32_48 = arith.constant 3 : i32
      %38 = tpu.dynamic_rotate %20 by %c3_i32_48 dim 2 : vector<1x1x128xf32>, i32 -> vector<1x1x128xf32>
      %39 = vector.broadcast %22 : f32 to vector<1x1x128xf32>
      %40 = arith.mulf %39, %37 : vector<1x1x128xf32>
      %41 = vector.broadcast %29 : f32 to vector<1x1x128xf32>
      %42 = arith.mulf %41, %38 : vector<1x1x128xf32>
      %43 = arith.addf %40, %42 : vector<1x1x128xf32>
      %c3_i32_49 = arith.constant 3 : i32
      %44 = vector.broadcast %c3_i32_49 : i32 to vector<1x1x128xi32>
      %45 = arith.cmpi sge, %21, %44 : vector<1x1x128xi32>
      %cst_50 = arith.constant 0.000000e+00 : f32
      %46 = vector.broadcast %cst_50 : f32 to vector<1x1x128xf32>
      %47 = arith.select %45, %43, %46 : vector<1x1x128xi1>, vector<1x1x128xf32>
      %48 = arith.addf %36, %47 : vector<1x1x128xf32>
      %c2_i32 = arith.constant 2 : i32
      %49 = tpu.dynamic_rotate %19 by %c2_i32 dim 2 : vector<1x1x128xf32>, i32 -> vector<1x1x128xf32>
      %c2_i32_51 = arith.constant 2 : i32
      %50 = tpu.dynamic_rotate %20 by %c2_i32_51 dim 2 : vector<1x1x128xf32>, i32 -> vector<1x1x128xf32>
      %51 = vector.broadcast %23 : f32 to vector<1x1x128xf32>
      %52 = arith.mulf %51, %49 : vector<1x1x128xf32>
      %53 = vector.broadcast %30 : f32 to vector<1x1x128xf32>
      %54 = arith.mulf %53, %50 : vector<1x1x128xf32>
      %55 = arith.addf %52, %54 : vector<1x1x128xf32>
      %c2_i32_52 = arith.constant 2 : i32
      %56 = vector.broadcast %c2_i32_52 : i32 to vector<1x1x128xi32>
      %57 = arith.cmpi sge, %21, %56 : vector<1x1x128xi32>
      %cst_53 = arith.constant 0.000000e+00 : f32
      %58 = vector.broadcast %cst_53 : f32 to vector<1x1x128xf32>
      %59 = arith.select %57, %55, %58 : vector<1x1x128xi1>, vector<1x1x128xf32>
      %60 = arith.addf %48, %59 : vector<1x1x128xf32>
      %c1_i32 = arith.constant 1 : i32
      %61 = tpu.dynamic_rotate %19 by %c1_i32 dim 2 : vector<1x1x128xf32>, i32 -> vector<1x1x128xf32>
      %c1_i32_54 = arith.constant 1 : i32
      %62 = tpu.dynamic_rotate %20 by %c1_i32_54 dim 2 : vector<1x1x128xf32>, i32 -> vector<1x1x128xf32>
      %63 = vector.broadcast %24 : f32 to vector<1x1x128xf32>
      %64 = arith.mulf %63, %61 : vector<1x1x128xf32>
      %65 = vector.broadcast %31 : f32 to vector<1x1x128xf32>
      %66 = arith.mulf %65, %62 : vector<1x1x128xf32>
      %67 = arith.addf %64, %66 : vector<1x1x128xf32>
      %c1_i32_55 = arith.constant 1 : i32
      %68 = vector.broadcast %c1_i32_55 : i32 to vector<1x1x128xi32>
      %69 = arith.cmpi sge, %21, %68 : vector<1x1x128xi32>
      %cst_56 = arith.constant 0.000000e+00 : f32
      %70 = vector.broadcast %cst_56 : f32 to vector<1x1x128xf32>
      %71 = arith.select %69, %67, %70 : vector<1x1x128xi1>, vector<1x1x128xf32>
      %72 = arith.addf %60, %71 : vector<1x1x128xf32>
      %73 = vector.broadcast %25 : f32 to vector<1x1x128xf32>
      %74 = arith.mulf %73, %19 : vector<1x1x128xf32>
      %75 = vector.broadcast %32 : f32 to vector<1x1x128xf32>
      %76 = arith.mulf %75, %20 : vector<1x1x128xf32>
      %77 = arith.addf %74, %76 : vector<1x1x128xf32>
      %78 = arith.addf %72, %77 : vector<1x1x128xf32>
      %c127_i32 = arith.constant 127 : i32
      %79 = tpu.dynamic_rotate %19 by %c127_i32 dim 2 : vector<1x1x128xf32>, i32 -> vector<1x1x128xf32>
      %c127_i32_57 = arith.constant 127 : i32
      %80 = tpu.dynamic_rotate %20 by %c127_i32_57 dim 2 : vector<1x1x128xf32>, i32 -> vector<1x1x128xf32>
      %81 = vector.broadcast %26 : f32 to vector<1x1x128xf32>
      %82 = arith.mulf %81, %79 : vector<1x1x128xf32>
      %83 = vector.broadcast %33 : f32 to vector<1x1x128xf32>
      %84 = arith.mulf %83, %80 : vector<1x1x128xf32>
      %85 = arith.addf %82, %84 : vector<1x1x128xf32>
      %c127_i32_58 = arith.constant 127 : i32
      %86 = vector.broadcast %c127_i32_58 : i32 to vector<1x1x128xi32>
      %87 = arith.cmpi slt, %21, %86 : vector<1x1x128xi32>
      %cst_59 = arith.constant 0.000000e+00 : f32
      %88 = vector.broadcast %cst_59 : f32 to vector<1x1x128xf32>
      %89 = arith.select %87, %85, %88 : vector<1x1x128xi1>, vector<1x1x128xf32>
      %90 = arith.addf %78, %89 : vector<1x1x128xf32>
      %c126_i32 = arith.constant 126 : i32
      %91 = tpu.dynamic_rotate %19 by %c126_i32 dim 2 : vector<1x1x128xf32>, i32 -> vector<1x1x128xf32>
      %c126_i32_60 = arith.constant 126 : i32
      %92 = tpu.dynamic_rotate %20 by %c126_i32_60 dim 2 : vector<1x1x128xf32>, i32 -> vector<1x1x128xf32>
      %93 = vector.broadcast %27 : f32 to vector<1x1x128xf32>
      %94 = arith.mulf %93, %91 : vector<1x1x128xf32>
      %95 = vector.broadcast %34 : f32 to vector<1x1x128xf32>
      %96 = arith.mulf %95, %92 : vector<1x1x128xf32>
      %97 = arith.addf %94, %96 : vector<1x1x128xf32>
      %c126_i32_61 = arith.constant 126 : i32
      %98 = vector.broadcast %c126_i32_61 : i32 to vector<1x1x128xi32>
      %99 = arith.cmpi slt, %21, %98 : vector<1x1x128xi32>
      %cst_62 = arith.constant 0.000000e+00 : f32
      %100 = vector.broadcast %cst_62 : f32 to vector<1x1x128xf32>
      %101 = arith.select %99, %97, %100 : vector<1x1x128xi1>, vector<1x1x128xf32>
      %102 = arith.addf %90, %101 : vector<1x1x128xf32>
      %c125_i32 = arith.constant 125 : i32
      %103 = tpu.dynamic_rotate %19 by %c125_i32 dim 2 : vector<1x1x128xf32>, i32 -> vector<1x1x128xf32>
      %c125_i32_63 = arith.constant 125 : i32
      %104 = tpu.dynamic_rotate %20 by %c125_i32_63 dim 2 : vector<1x1x128xf32>, i32 -> vector<1x1x128xf32>
      %105 = vector.broadcast %28 : f32 to vector<1x1x128xf32>
      %106 = arith.mulf %105, %103 : vector<1x1x128xf32>
      %107 = vector.broadcast %35 : f32 to vector<1x1x128xf32>
      %108 = arith.mulf %107, %104 : vector<1x1x128xf32>
      %109 = arith.addf %106, %108 : vector<1x1x128xf32>
      %c125_i32_64 = arith.constant 125 : i32
      %110 = vector.broadcast %c125_i32_64 : i32 to vector<1x1x128xi32>
      %111 = arith.cmpi slt, %21, %110 : vector<1x1x128xi32>
      %cst_65 = arith.constant 0.000000e+00 : f32
      %112 = vector.broadcast %cst_65 : f32 to vector<1x1x128xf32>
      %113 = arith.select %111, %109, %112 : vector<1x1x128xi1>, vector<1x1x128xf32>
      %114 = arith.addf %102, %113 : vector<1x1x128xf32>
      %115 = arith.negf %114 : vector<1x1x128xf32>
      %116 = math.exp %115 : vector<1x1x128xf32>
      %cst_66 = arith.constant 1.000000e+00 : f32
      %117 = vector.broadcast %cst_66 : f32 to vector<1x1x128xf32>
      %118 = arith.addf %117, %116 : vector<1x1x128xf32>
      %119 = arith.divf %117, %118 : vector<1x1x128xf32>
      %c0_67 = arith.constant 0 : index
      %c0_68 = arith.constant 0 : index
      %c0_69 = arith.constant 0 : index
      %120 = vector.load %arg4[%c0_67, %c0_68, %c0_69] : memref<1x1x128xf32, #tpu.memory_space<vmem>>, vector<1x1x128xf32>
      tpu.vector_store %arg4[%c0_67, %c0_68, %c0_69], %119 {strides = array<i32>} : memref<1x1x128xf32, #tpu.memory_space<vmem>>, vector<1x1x128xf32>,
    } else {
    }
    return
  }
  func.func @transform_0(%arg0: i32, %arg1: i32) -> (i32, i32, i32) {
    %c0_i32 = arith.constant 0 : i32
    %c0_i32_0 = arith.constant 0 : i32
    return %arg0, %arg1, %c0_i32 : i32, i32, i32
  }
  func.func @transform_1(%arg0: i32, %arg1: i32) -> (i32, i32) {
    %c0_i32 = arith.constant 0 : i32
    %c0_i32_0 = arith.constant 0 : i32
    %c0_i32_1 = arith.constant 0 : i32
    return %c0_i32, %c0_i32_0 : i32, i32
  }
  func.func @transform_2(%arg0: i32, %arg1: i32) -> (i32, i32, i32) {
    %c0_i32 = arith.constant 0 : i32
    %c0_i32_0 = arith.constant 0 : i32
    %c0_i32_1 = arith.constant 0 : i32
    return %arg0, %c0_i32, %c0_i32_0 : i32, i32, i32
  }
}

</mosaic_0001>

<bundles_post_ra>
// kernel: tpu_custom_call.1
= control target key start
LH: loop header
LB: loop body
LE: loop exit
PB: predicated region body
PF: predicated region fallthrough
CT: control target
= control target key end

     0   :  { %7 = vsyncpa [#allocation5], 0  ;;  %s914_s0 = inlined_call_operand.hbm [shape: f32[2,4,128], index: 0, kind: input, shape index: {}]   ;;  %s915_s1 = inlined_call_operand.vmem [shape: f32[2,7], index: 1, kind: input, shape index: {}]   ;;  %s916_s2 = inlined_call_operand.hbm [shape: f32[2,1,128], index: 2, kind: output, shape index: {}]  }
   0x1   :  { %9 = vsyncpa [#allocation5 + $0x1], 0 }
   0x2   :  { %10 = vsyncpa [#allocation7], 0 }
   0x3   :  { %11 = vsyncpa [#allocation6], 0 }
   0x4   :  { %13 = vsyncpa [#allocation6 + $0x1], 0  ;;  %s693_s9 = smov 0   ;;  %s695_s10 = smov 0  }
   0x5   :  { %s697_s11 = smov 0   ;;  %s699_s12 = smov 0  }
   0x6   :  { %s701_s13 = smov 0   ;;  %s703_s14 = smov 0  }
   0x7 LB: > { %s422_s15 = sadd.s32 4294967295, %s665_s14   ;;  %s423_s16 = sadd.s32 4294967294, %s665_s14   ;;  %s665_s14 = sphi %s703_s14, %s19_s14   ;;  %s661_s13 = sphi %s701_s13, %s938_s13   ;;  %s657_s12 = sphi %s699_s12, %s937_s12   ;;  %s653_s11 = sphi %s697_s11, %s936_s11   ;;  %s649_s10 = sphi %s695_s10, %s935_s10   ;;  %s645_s9 = sphi %s693_s9, %s934_s9  }
   0x8   : > { %p53_p0 = scmp.ne.s32.totalorder %s649_s10, %s645_s9  ;;  %p727_p1 = scmp.eq.s32.totalorder %s422_s15, 0 }
   0x9   : > { %p731_p2 = scmp.eq.s32.totalorder %s422_s15, 1  ;;  %p104_p3 = scmp.eq.s32.totalorder %s423_s16, 1 }
   0xa   : > { %s921_s17 = scalar_select %p727_p1, 1, 0 }
   0xb   : > { %p737_p4 = por %p727_p1, %p53_p0  ;;  %p424_p5 = scmp.ge.s32.totalorder %s665_s14, 1 }
   0xc   : > { %p742_p6 = por %p104_p3, %p53_p0  ;;  %p111_p7 = scmp.lt.s32.totalorder %s665_s14, 3 }
   0xd   : > { %s923_s19 = scalar_select %p737_p4, 1, 0 }
   0xe   : > { %s924_s20 = scalar_select %p742_p6, 1, 0 }
   0xf   : > { %s124_s23 = sshll.u32 %s915_s1, 4  ;;  %p750_p8 = pnand %p424_p5, %p111_p7  ;;  %s125_s23 = int_to_ptr.vmem [resolvable:$true] %s124_s23 }
  0x10   : > { %s31_s26 = sadd.s32 1, %s661_s13  ;;  %s40_s27 = sadd.s32 1, %s653_s11 }
  0x11   : > { %p457_p10 = pneg %p750_p8  ;;  %p33_p12 = scmp.ge.s32.totalorder %s31_s26, 2 }
  0x12   : > { %s534_s28 = scalar_lea.vmem %s125_s23, 32  ;;  %p542_p7 = scmp.lt.s32.totalorder %s125_s23, %s125_s23 }
  0x13   : > { %p759_p11 = pnand %p457_p10, %p727_p1  ;;  %p535_p13 = scmp.ne.s32.totalorder %s125_s23, %s534_s28 }
  0x14   : > { %p543_p6 = scmp.lt.s32.totalorder %s534_s28, %s534_s28 }
  0x15   : > { %p536_p0 = pneg %p759_p11 }
  0x16   : > { %p544_p9 = por %p543_p6, %p542_p7 }
  0x17   : > { %p537_p3 = pnand %p536_p0, %p535_p13 }
  0x19   : > { %p538_p5 = pneg %p537_p3 }
  0x1b   : > { %p545_p4 = pnand %p544_p9, %p538_p5 }
  0x1d   : > { %548 = shalt.err (!%p545_p4)
}
  0x1e   : > { %s667_s29 = smov [#allocation8]   ;;  %s940_s26 = smov (%p33_p12, %s31_s26), 0 }
  0x1f   : > { %460 = dma.vmem_to_smem (!%p759_p11), %s125_s23, 32, %s667_s29, [#allocation7]  }
  0x20   : > { %p47_p10 = scmp.ne.s32.totalorder %s653_s11, %s649_s10  ;;  %p48_p6 = scmp.eq.s32.totalorder %s665_s14, 0 }
  0x21   : > { %s35_s30 = ssub.s32 %s661_s13, %s940_s26  ;;  %p470_p4 = scmp.lt.s32.totalorder %s665_s14, 2 }
  0x22   : > { %p38_p9 = scmp.eq.s32.totalorder %s35_s30, 0  ;;  %p49_p13 = por %p48_p6, %p47_p10 }
  0x23   : > { %p779_p0 = por %p731_p2, %p47_p10  ;;  %s135_s4 = sand.u32 1, %s653_s11  }
  0x24   : > { %s785_s5 = scalar_select %p38_p9, %s653_s11, %s40_s27  }
  0x25   : > { %s927_s3 = scalar_select %p779_p0, 1, 0 }
  0x26   : > { %s427_s6 = sshll.u32 %s135_s4, 2  ;;  %s428_s7 = sshll.u32 %s661_s13, 6 }
  0x27   : > { %s791_s16 = scalar_lea.hbm %s914_s0, %s428_s7  ;;  %s139_s21 = scalar_lea.vmem [#allocation4], %s427_s6 }
  0x28   : > { %s147_s18 = sshll.u32 %s139_s21, 4  ;;  %p795_p2 = pnand %p470_p4, %p49_p13  ;;  %s793_s18 = int_to_ptr.vmem [resolvable:$true] %s147_s18 }
  0x29   : > { %s136_s23 = scalar_lea.sflag [#allocation5], %s135_s4  ;;  %s549_s25 = scalar_lea.hbm %s791_s16, 64 }
  0x2a   : > { %p550_p11 = scmp.ne.s32.totalorder %s791_s16, %s549_s25  ;;  %p551_p12 = pneg %p795_p2 }
  0x2b   : > { %s554_s29 = scalar_lea.hbm %s914_s0, 128  ;;  %p555_p7 = scmp.lt.u32.totalorder %s791_s16, %s914_s0 }
  0x2c   : > { %p552_p3 = pnand %p551_p12, %p550_p11  ;;  %p556_p10 = scmp.lt.u32.totalorder %s554_s29, %s549_s25 }
  0x2d   : > { %p558_p4 = scmp.lt.u32.totalorder %s549_s25, %s791_s16 }
  0x2e   : > { %p553_p5 = pneg %p552_p3  ;;  %p557_p6 = por %p556_p10, %p555_p7 }
  0x30   : > { %p559_p9 = por %p558_p4, %p557_p6 }
  0x32   : > { %p560_p13 = pnand %p559_p9, %p553_p5 }
  0x34   : > { %563 = shalt.err (!%p560_p13)
}
  0x35   : > { %s564_s4 = scalar_lea.vmem %s793_s18, 64  ;;  %s668_s7 = smov [#allocation4]  }
  0x36   : > { %p565_p11 = scmp.ne.s32.totalorder %s793_s18, %s564_s4  ;;  %s569_s8 = sshll.u32 %s668_s7, 4  ;;  %s570_s8 = int_to_ptr.vmem [resolvable:$false] %s569_s8 }
  0x37   : > { %s571_s15 = scalar_lea.vmem %s570_s8, 128  ;;  %p572_p1 = scmp.lt.s32.totalorder %s793_s18, %s570_s8 }
  0x38   : > { %p567_p3 = pnand %p565_p11, %p551_p12  ;;  %p573_p7 = scmp.lt.s32.totalorder %s571_s15, %s564_s4 }
  0x3a   : > { %p568_p0 = pneg %p567_p3  ;;  %p574_p10 = por %p573_p7, %p572_p1 }
  0x3c   : > { %p575_p6 = pnand %p574_p10, %p568_p0 }
  0x3e   : > { %578 = shalt.err (!%p575_p6)
}
  0x3f   : > { %464 = dma.hbm_to_vmem [thread:$0]  (!%p795_p2), %s791_s16, 64, %s793_s18, %s136_s23  }
  0x40   : > { %156 = sbr.rel (%p750_p8) target bundleno = 283 (0x11b), region = 28  ;;  %s827_s21 = sand.u32 (!%p750_p8), 1, %s649_s10  }
  0x41   : > { %s430_s25 = sshll.u32 (!%p750_p8), %s827_s21, 2  ;;  %s159_s27 = scalar_lea.sflag (!%p750_p8), [#allocation5], %s827_s21 }
  0x42   : > { %s162_s28 = scalar_lea.vmem (!%p750_p8), [#allocation4], %s430_s25  ;;  %p929_p1 = scmp.ne.s32.totalorder (!%p750_p8), %s923_s19, 0 }
  0x47   : > { %632 = dma.done.wait (%p929_p1), %s159_s27, 64  }
  0x48   : > { %634 = vsyncadd (%p929_p1), %s159_s27, 4294967232  ;;  %p930_p0 = scmp.ne.s32.totalorder %s921_s17, 0 }
  0x4a   : > { %636 = dma.done.wait (%p930_p0), [#allocation7], 32  }
  0x4b   : > { %638 = vsyncadd (%p930_p0), [#allocation7], 4294967264 }
  0x4c   : > { %171 = sfence }
  0x4d   : > { %v193_v0 = vld [vmem:[%s162_s28] sm:$0xf]  ;;  %vm195_vm0 = vcmask 1043456   ;;  %v669_v1 = vmov -inf   ;;  %v670_v6 = vmov 0.0   ;;  %s434_s17 = sld [smem:[#allocation8 + $0x3]]  ;;  %v221_v31 = vlaneseq }
  0x4e   : > { %192 = vst [vmem:[#allocation3] sm:$0x1] %v669_v1  ;;  %v196_v2 = vsel %vm195_vm0, %v193_v0, 0.0  ;;  %v206_v3 = vsel %vm195_vm0, %v193_v0, -inf  ;;  %191 = vst [vmem:[#allocation2] sm:$0x1] %v670_v6 }
  0x4f   : > { %v197_v4 = vrot.slane %v196_v2, 4  ;;  %v207_v5 = vrot.slane %v206_v3, 4  ;;  %s441_s19 = sld [smem:[#allocation8 + $0x83]]  ;;  %s671_s24 = smov 2   ;;  %v222_v39 = vand.u32 127, %v221_v31 }
  0x50   : > { %s672_s16 = smov 3   ;;  %s673_s18 = smov 1  }
  0x51   : > { %v198_v7 = vadd.f32 %v197_v4, %v196_v2  ;;  %v208_v8 = vmax.f32 %v206_v3, %v207_v5  ;;  %s674_s22 = smov 127   ;;  %s675_s23 = smov 126   ;;  %vm246_vm1 = vcmp.ge.s32.totalorder %v222_v39, 3  ;;  %vm258_vm2 = vcmp.ge.s32.totalorder %v222_v39, 2 }
  0x52   : > { %s676_s29 = smov 125   ;;  %s223_s30 = sld [smem:[#allocation8]]  ;;  %vm270_vm3 = vcmp.ge.s32.totalorder %v222_v39, 1  ;;  %vm288_vm4 = vcmp.lt.s32.totalorder %v222_v39, 127  ;;  %vm300_vm5 = vcmp.lt.s32.totalorder %v222_v39, 126  ;;  %vm312_vm6 = vcmp.lt.s32.totalorder %v222_v39, 125 }
  0x53   : > { %v199_v9 = vrot.slane %v198_v7, 2  ;;  %v209_v10 = vrot.slane %v208_v8, 2  ;;  %v273_v23 = vstv %s434_s17  ;;  %s438_s6 = sld [smem:[#allocation8 + $0x80]]  ;;  %s439_s4 = sld [smem:[#allocation8 + $0x81]] }
  0x54   : > { %s440_s7 = sld [smem:[#allocation8 + $0x82]]  ;;  %s432_s8 = sld [smem:[#allocation8 + $0x1]] }
  0x55   : > { %v200_v11 = vadd.f32 %v199_v9, %v198_v7  ;;  %v210_v12 = vmax.f32 %v208_v8, %v209_v10  ;;  %v205_v15 = vld [vmem:[#allocation3] sm:$0x1]  ;;  %v194_v16 = vld [vmem:[#allocation2] sm:$0x1]  ;;  %v275_v24 = vstv %s441_s19  ;;  %s433_s15 = sld [smem:[#allocation8 + $0x2]]  ;;  %s841_s25 = sld [smem:[#allocation8 + $0x84]] }
  0x56   : > { %s843_s27 = sld [smem:[#allocation8 + $0x4]]  ;;  %s845_s28 = sld [smem:[#allocation8 + $0x85]] }
  0x57   : > { %v201_v13 = vrot.slane %v200_v11, 1  ;;  %v211_v14 = vrot.slane %v210_v12, 1  ;;  %s847_s17 = sld [smem:[#allocation8 + $0x5]]  ;;  %s851_s19 = sld [smem:[#allocation8 + $0x86]] }
  0x58   : > { %v241_v32 = vstv %s223_s30  ;;  %p931_p2 = scmp.ne.s32.totalorder %s927_s3, 0 }
  0x59   : > { %v202_v17 = vadd.f32 %v201_v13, %v200_v11  ;;  %v212_v18 = vmax.f32 %v210_v12, %v211_v14  ;;  %v243_v33 = vstv %s438_s6  ;;  %v255_v36 = vstv %s439_s4  ;;  %s323_s6 = scalar_lea.sflag [#allocation6], %s827_s21 }
  0x5a   : > { %v267_v38 = vstv %s440_s7  ;;  %v253_v40 = vstv %s432_s8 }
  0x5b   : > { %v213_v19 = vmax.f32 %v205_v15, %v212_v18  ;;  %v203_v20 = vadd.f32 %v202_v17, %v194_v16  ;;  %v265_v41 = vstv %s433_s15  ;;  %v285_v50 = vstv %s841_s25 }
  0x5c   : > { %v283_v51 = vstv %s843_s27  ;;  %v297_v61 = vstv %s845_s28 }
  0x5d   : > { %214 = vst [vmem:[#allocation3] sm:$0x1] %v213_v19  ;;  %204 = vst [vmem:[#allocation2] sm:$0x1] %v203_v20  ;;  %v295_v62 = vstv %s847_s17  ;;  %v309_v7 = vstv %s851_s19 }
  0x64   : > { %v220_v21 = vld [vmem:[#allocation3] sm:$0x1]  ;;  %v218_v22 = vld [vmem:[#allocation2] sm:$0x1] }
  0x65   : > { %251 = vrot.lane.b32.xlu1 %v220_v21, %s671_s24  ;;  %239 = vrot.lane.b32.xlu0 %v220_v21, %s672_s16  ;;  %v219_v25 = vmul.f32 0.25, %v218_v22  ;;  %v276_v26 = vmul.f32 %v275_v24, %v220_v21 }
  0x67   : > { %v274_v27 = vmul.f32 %v273_v23, %v219_v25 }
  0x69   : > { %263 = vrot.lane.b32.xlu1 %v220_v21, %s673_s18  ;;  %237 = vrot.lane.b32.xlu0 %v219_v25, %s672_s16  ;;  %v839_v28 = vadd.f32 %v276_v26, %v274_v27  ;;  %s446_s16 = sshll.u32 %s657_s12, 4  ;;  %s677_s12 = smov [#allocation9]  }
  0x6a   : > { %s865_s30 = scalar_lea.hbm %s916_s2, %s446_s16  ;;  %s583_s7 = sshll.u32 %s677_s12, 4  ;;  %s584_s7 = int_to_ptr.vmem [resolvable:$false] %s583_s7 }
  0x6b   : > { %s585_s8 = scalar_lea.vmem %s584_s7, 32 }
  0x6d   : > { %249 = vrot.lane.b32.xlu1 %v219_v25, %s671_s24  ;;  %261 = vrot.lane.b32.xlu0 %v219_v25, %s673_s18  ;;  %s853_s24 = sld [smem:[#allocation8 + $0x6]]  ;;  %s186_s18 = scalar_lea.vmem [#allocation9], %s827_s21 }
  0x71   : > { %281 = vrot.lane.b32.xlu1 %v220_v21, %s674_s22  ;;  %279 = vrot.lane.b32.xlu0 %v219_v25, %s674_s22  ;;  %s335_s22 = sshll.u32 %s186_s18, 4  ;;  %s867_s22 = int_to_ptr.vmem [resolvable:$true] %s335_s22 }
  0x72   : > { %s579_s4 = scalar_lea.vmem %s867_s22, 16  ;;  %p586_p4 = scmp.lt.s32.totalorder %s867_s22, %s584_s7 }
  0x73   : > { %v307_v8 = vstv %s853_s24  ;;  %p580_p8 = scmp.ne.s32.totalorder %s867_s22, %s579_s4  ;;  %p587_p9 = scmp.lt.s32.totalorder %s585_s8, %s579_s4 }
  0x75   : > { %293 = vrot.lane.b32.xlu1 %v220_v21, %s675_s23  ;;  %291 = vrot.lane.b32.xlu0 %v219_v25, %s675_s23  ;;  %p581_p12 = pnand %p580_p8, %p931_p2  ;;  %p588_p13 = por %p587_p9, %p586_p4 }
  0x77   : > { %p582_p5 = pneg %p581_p12 }
  0x79   : > { %305 = vrot.lane.b32.xlu1 %v220_v21, %s676_s29  ;;  %303 = vrot.lane.b32.xlu0 %v219_v25, %s676_s29  ;;  %p589_p11 = pnand %p588_p13, %p582_p5 }
  0xd7   : > { %v252_v29 = vpop.permute.xlu1 %251  ;;  %v240_v30 = vpop.permute.xlu0 %239 }
  0xd8   : > { %v244_v42 = vmul.f32 %v243_v33, %v240_v30  ;;  %v256_v43 = vmul.f32 %v255_v36, %v252_v29 }
  0xdb   : > { %v264_v34 = vpop.permute.xlu1 %263  ;;  %v238_v35 = vpop.permute.xlu0 %237 }
  0xdc   : > { %v242_v37 = vmul.f32 %v241_v32, %v238_v35  ;;  %v268_v46 = vmul.f32 %v267_v38, %v264_v34 }
  0xde   : > { %v245_v47 = vadd.f32 %v244_v42, %v242_v37 }
  0xdf   : > { %v250_v44 = vpop.permute.xlu1 %249  ;;  %v262_v45 = vpop.permute.xlu0 %261 }
  0xe0   : > { %v254_v48 = vmul.f32 %v253_v40, %v250_v44  ;;  %v266_v49 = vmul.f32 %v265_v41, %v262_v45  ;;  %v247_v56 = vsel %vm246_vm1, %v245_v47, 0.0 }
  0xe2   : > { %v257_v52 = vadd.f32 %v256_v43, %v254_v48  ;;  %v269_v53 = vadd.f32 %v268_v46, %v266_v49 }
  0xe3   : > { %v282_v54 = vpop.permute.xlu1 %281  ;;  %v280_v55 = vpop.permute.xlu0 %279 }
  0xe4   : > { %v259_v57 = vsel %vm258_vm2, %v257_v52, 0.0  ;;  %v286_v58 = vmul.f32 %v285_v50, %v282_v54  ;;  %v284_v59 = vmul.f32 %v283_v51, %v280_v55  ;;  %v271_v63 = vsel %vm270_vm3, %v269_v53, 0.0 }
  0xe5   : > { %v260_v60 = vadd.f32 %v259_v57, %v247_v56 }
  0xe6   : > { %v287_v0 = vadd.f32 %v286_v58, %v284_v59 }
  0xe7   : > { %v272_v1 = vadd.f32 %v271_v63, %v260_v60  ;;  %v294_v2 = vpop.permute.xlu1 %293  ;;  %v292_v3 = vpop.permute.xlu0 %291 }
  0xe8   : > { %v298_v4 = vmul.f32 %v297_v61, %v294_v2  ;;  %v296_v5 = vmul.f32 %v295_v62, %v292_v3  ;;  %v289_v9 = vsel %vm288_vm4, %v287_v0, 0.0 }
  0xe9   : > { %v278_v6 = vadd.f32 %v839_v28, %v272_v1 }
  0xea   : > { %v299_v10 = vadd.f32 %v298_v4, %v296_v5 }
  0xeb   : > { %v290_v11 = vadd.f32 %v289_v9, %v278_v6  ;;  %v306_v12 = vpop.permute.xlu1 %305  ;;  %v304_v13 = vpop.permute.xlu0 %303 }
  0xec   : > { %v301_v14 = vsel %vm300_vm5, %v299_v10, 0.0  ;;  %v310_v15 = vmul.f32 %v309_v7, %v306_v12  ;;  %v308_v16 = vmul.f32 %v307_v8, %v304_v13 }
  0xed   : > { %v302_v18 = vadd.f32 %v301_v14, %v290_v11 }
  0xee   : > { %v311_v17 = vadd.f32 %v310_v15, %v308_v16 }
  0xf0   : > { %v313_v19 = vsel %vm312_vm6, %v311_v17, 0.0 }
  0xf1   : > { %v314_v20 = vadd.f32 %v313_v19, %v302_v18 }
  0xf3   : > { %v445_v21 = vmul.f32 -1.442695, %v314_v20 }
  0xf5   : > { %530 = vpow2.f32 %v445_v21 }
  0xff   : > { %v531_v22 = vpop.eup %530 }
 0x100   : > { %v318_v23 = vadd.f32 1.0, %v531_v22 }
 0x102   : > { %532 = vrcp.f32 %v318_v23 }
 0x10c   : > { %v533_v24 = vpop.eup %532 }
 0x10d   : > { %321 = vst [vmem:[%s186_s18] sm:$0x1] %v533_v24 }
 0x10e   : > { %592 = shalt.err (!%p589_p11)
}
 0x10f   : > { %s593_s21 = scalar_lea.hbm %s865_s30, 16  ;;  %s597_s27 = scalar_lea.hbm %s916_s2, 32 }
 0x110   : > { %p594_p3 = scmp.ne.s32.totalorder %s865_s30, %s593_s21  ;;  %p598_p6 = scmp.lt.u32.totalorder %s865_s30, %s916_s2 }
 0x111   : > { %p599_p1 = scmp.lt.u32.totalorder %s597_s27, %s593_s21  ;;  %p601_p8 = scmp.lt.u32.totalorder %s593_s21, %s865_s30 }
 0x112   : > { %p595_p7 = pnand %p594_p3, %p931_p2 }
 0x113   : > { %p600_p0 = por %p599_p1, %p598_p6 }
 0x114   : > { %p596_p10 = pneg %p595_p7 }
 0x115   : > { %p602_p12 = por %p601_p8, %p600_p0 }
 0x117   : > { %p603_p5 = pnand %p602_p12, %p596_p10 }
 0x119   : > { %606 = shalt.err (!%p603_p5)
}
 0x11a   : > { %455 = dma.vmem_to_hbm [thread:$0]  (%p931_p2), %s867_s22, 16, %s865_s30, %s323_s6  }
 0x11b PF: > { %s347_s19 = sand.u32 1, %s645_s9   ;;  %p932_p4 = scmp.ne.s32.totalorder %s924_s20, 0 }
 0x11c   : > { %p933_p9 = scmp.ge.s32.totalorder %s665_s14, 2  ;;  %s348_s24 = scalar_lea.sflag [#allocation6], %s347_s19 }
 0x11e   : > { %p466_p13 = pnand %p933_p9, %p932_p4 }
 0x120   : > { %640 = dma.done.wait (!%p466_p13), %s348_s24, 16  }
 0x121   : > { %642 = vsyncadd (!%p466_p13), %s348_s24, 4294967280  ;;  %s19_s14 = sadd.s32 1, %s665_s14   ;;  %s934_s9 = smov %s649_s10 }
 0x122   : > { %p16_p11 = scmp.ge.s32.totalorder %s19_s14, 4   ;;  %s935_s10 = smov %s653_s11 }
 0x123   : > { %s936_s11 = smov %s785_s5  ;;  %s937_s12 = smov %s661_s13 }
 0x124   : > { %s938_s13 = smov %s940_s26  ;;  %18 = sbr.rel (!%p16_p11) target bundleno = 7 (0x7), region = 86 }
 0x12b   :  { %352 = vsyncpa [#allocation5], 1 }
 0x12c   :  { %354 = vsyncpa [#allocation5 + $0x1], 1 }
 0x12d   :  { %355 = vsyncpa [#allocation6], 1 }
 0x12e   :  { %357 = vsyncpa [#allocation6 + $0x1], 1 }
 0x12f   :  { %358 = vsyncpa [#allocation7], 1 }
 0x130   :  { %360 = vsyncpa [#allocation7 + $0x1], 1 }

</bundles_post_ra>
